<compile_context>
chip_gen: v6e
topology: v6e:2x2x1
jax: 0.10.0
libtpu: 0.0.40
codegen_flags: <defaults>
</compile_context>

<pallas_src>
import jax
import jax.numpy as jnp
from jax.experimental import pallas as pl
from jax.experimental.pallas import tpu as pltpu

LANE = 128


def _round_up(x, m):
    return (x + m - 1) // m * m


# ----------------------------- Pallas kernel ------------------------------ #

def _generator_mlp_kernel(z_ref, w1_ref, b1_ref, w2_ref, b2_ref,
                          w3_ref, b3_ref, out_ref):
    """3-layer MLP on one batch tile. Dots run in bf16 on the MXU with f32
    accumulation; bias / LeakyReLU / tanh stay f32 on the VPU/EUP."""
    # Layer 1: Linear + LeakyReLU(0.2)
    h = jnp.dot(z_ref[...], w1_ref[...],
                preferred_element_type=jnp.float32) + b1_ref[...]
    h = jnp.maximum(h, 0.2 * h)          # LeakyReLU(0.2), slope < 1

    # Layer 2: Linear + LeakyReLU(0.2)
    h = jnp.dot(h.astype(jnp.bfloat16), w2_ref[...],
                preferred_element_type=jnp.float32) + b2_ref[...]
    h = jnp.maximum(h, 0.2 * h)

    # Layer 3: Linear + Tanh
    h = jnp.dot(h.astype(jnp.bfloat16), w3_ref[...],
                preferred_element_type=jnp.float32) + b3_ref[...]
    out_ref[...] = jnp.tanh(h)


def generator_forward(z, w1, b1, w2, b2, w3, b3, *, block_b=256):
    """Run the generator MLP.

    z: (B, z_dim) f32. Weights must be bf16 and w3/b3 lane-padded (last dim a
    multiple of 128). Returns (B, out_dim_padded) f32; caller slices the true
    out_dim columns.
    """
    batch, z_dim = z.shape
    out_dim_p = w3.shape[1]

    # Batch tiling: up to 256 rows per tile fills the MXU; small batches use
    # a single tile (grid of 1) so there is no per-step overhead.
    tb = min(block_b, max(batch, 8))
    padded_b = pl.cdiv(batch, tb) * tb

    z = z.astype(jnp.bfloat16)           # bf16 dot input, halves z DMA bytes
    if padded_b != batch:
        z = jnp.pad(z, ((0, padded_b - batch), (0, 0)))

    batch_spec = lambda cols: pl.BlockSpec((tb, cols), lambda i: (i, 0))
    resident = lambda shape: pl.BlockSpec(shape, lambda i: (0, 0))

    out = pl.pallas_call(
        _generator_mlp_kernel,
        out_shape=jax.ShapeDtypeStruct((padded_b, out_dim_p), jnp.float32),
        grid=(padded_b // tb,),
        in_specs=[
            batch_spec(z_dim),
            resident(w1.shape), resident(b1.shape),
            resident(w2.shape), resident(b2.shape),
            resident(w3.shape), resident(b3.shape),
        ],
        out_specs=batch_spec(out_dim_p),
        compiler_params=pltpu.CompilerParams(
            dimension_semantics=("parallel",),
            vmem_limit_bytes=8 << 20,
        ),
    )(z, w1, b1, w2, b2, w3, b3)
    return out[:batch]


# --------------------------- Parameter creation ---------------------------- #

def kaiming_normal(key, fan_in, fan_out):
    """Matches nn.init.kaiming_normal_(weight) defaults: std = sqrt(2/fan_in).
    PyTorch weight is (out, in); sample that shape then transpose so the
    kernel computes x @ W^T exactly like F.linear(x, W)."""
    std = (2.0 / fan_in) ** 0.5
    w = jax.random.normal(key, (fan_out, fan_in), dtype=jnp.float32) * std
    return jnp.transpose(w)


def make_generator_params(key, z_dim, out_dim, hidden=256):
    k1, k2, k3 = jax.random.split(key, 3)
    out_dim_p = _round_up(out_dim, LANE)

    w1 = kaiming_normal(k1, z_dim, hidden)
    b1 = jnp.zeros((1, hidden), jnp.float32)
    w2 = kaiming_normal(k2, hidden, hidden)
    b2 = jnp.zeros((1, hidden), jnp.float32)
    w3 = kaiming_normal(k3, hidden, out_dim)
    # Lane-pad layer-3 output columns (784 -> 896); padded cols are zero and
    # sliced off by the caller, so semantics are unchanged.
    w3 = jnp.pad(w3, ((0, 0), (0, out_dim_p - out_dim)))
    b3 = jnp.zeros((1, out_dim_p), jnp.float32)

    # bf16 weights for the MXU; biases stay f32 for the VPU adds.
    return (w1.astype(jnp.bfloat16), b1,
            w2.astype(jnp.bfloat16), b2,
            w3.astype(jnp.bfloat16), b3)


# --------------------------------- Main ------------------------------------ #

if __name__ == "__main__":
    # Module defaults: output_shape=[1, 28, 28], z_dim=64; small batch.
    batch_size = 8
    z_dim = 64
    out_c, out_h, out_w = 1, 28, 28
    out_dim = out_c * out_h * out_w  # 784

    root = jax.random.PRNGKey(0)
    key_params, key_z = jax.random.split(root)

    params = make_generator_params(key_params, z_dim, out_dim)

    # Generator.sample(batch_size): z ~ N(0, 1)
    # TODO(synk): z could be sampled in-kernel with pltpu.prng_* to skip the
    # HBM round-trip; kept host-side for deterministic comparison.
    z = jax.random.normal(key_z, (batch_size, z_dim), dtype=jnp.float32)

    flat = generator_forward(z, *params)[:, :out_dim]        # (B, C*H*W)
    out = flat.reshape(batch_size, out_c, out_h, out_w)      # NCHW, like .view()
    out = jax.block_until_ready(out)

    # Reference check: identical bf16-weight / f32-accumulation math in plain JAX.
    w1, b1, w2, b2, w3, b3 = params
    h = jnp.dot(z.astype(jnp.bfloat16), w1,
                preferred_element_type=jnp.float32) + b1
    h = jnp.where(h > 0, h, 0.2 * h)
    h = jnp.dot(h.astype(jnp.bfloat16), w2,
                preferred_element_type=jnp.float32) + b2
    h = jnp.where(h > 0, h, 0.2 * h)
    ref = jnp.tanh(jnp.dot(h.astype(jnp.bfloat16), w3,
                           preferred_element_type=jnp.float32) + b3)
    ref = ref[:, :out_dim].reshape(batch_size, out_c, out_h, out_w)

    assert out.shape == (batch_size, out_c, out_h, out_w)
    assert jnp.allclose(out, ref, atol=2e-3, rtol=2e-3), \
        float(jnp.max(jnp.abs(out - ref)))

    print("KERNEL_OK")
</pallas_src>

<mosaic_0001>
module attributes {stable_mosaic.version = 11 : i64} {
  func.func @_generator_mlp_kernel(%arg0: i32, %arg1: memref<8x64xbf16, #tpu.memory_space<vmem>>, %arg2: memref<64x256xbf16, #tpu.memory_space<vmem>>, %arg3: memref<1x256xf32, #tpu.memory_space<vmem>>, %arg4: memref<256x256xbf16, #tpu.memory_space<vmem>>, %arg5: memref<1x256xf32, #tpu.memory_space<vmem>>, %arg6: memref<256x896xbf16, #tpu.memory_space<vmem>>, %arg7: memref<1x896xf32, #tpu.memory_space<vmem>>, %arg8: memref<8x896xf32, #tpu.memory_space<vmem>>) attributes {dimension_semantics = [#tpu.dimension_semantics<parallel>], iteration_bounds = array<i64: 1>, scalar_prefetch = 0 : i64, scratch_operands = 0 : i64, tpu.core_type = #tpu.core_type<tc>, window_params = [{transform_indices = @transform_0, window_bounds = array<i64: 8, 64>}, {pipeline_mode = #tpu.pipeline_mode<synchronous>, transform_indices = @transform_1, window_bounds = array<i64: 64, 256>}, {pipeline_mode = #tpu.pipeline_mode<synchronous>, transform_indices = @transform_2, window_bounds = array<i64: 1, 256>}, {pipeline_mode = #tpu.pipeline_mode<synchronous>, transform_indices = @transform_3, window_bounds = array<i64: 256, 256>}, {pipeline_mode = #tpu.pipeline_mode<synchronous>, transform_indices = @transform_4, window_bounds = array<i64: 1, 256>}, {pipeline_mode = #tpu.pipeline_mode<synchronous>, transform_indices = @transform_5, window_bounds = array<i64: 256, 896>}, {pipeline_mode = #tpu.pipeline_mode<synchronous>, transform_indices = @transform_6, window_bounds = array<i64: 1, 896>}, {transform_indices = @transform_7, window_bounds = array<i64: 8, 896>}]} {
    %c0 = arith.constant 0 : index
    %c0_0 = arith.constant 0 : index
    %0 = vector.load %arg1[%c0, %c0_0] : memref<8x64xbf16, #tpu.memory_space<vmem>>, vector<8x64xbf16>
    %c0_1 = arith.constant 0 : index
    %c0_2 = arith.constant 0 : index
    %1 = vector.load %arg2[%c0_1, %c0_2] : memref<64x256xbf16, #tpu.memory_space<vmem>>, vector<64x256xbf16>
    %cst = arith.constant dense<0.000000e+00> : vector<8x256xf32>
    %2 = tpu.matmul %0, %1, %cst {dimension_numbers = #tpu.dot_dimension_numbers<[1], [0], [0], [1], [0, 0, 1, 1], [], []>} : vector<8x64xbf16>, vector<64x256xbf16>, vector<8x256xf32> -> vector<8x256xf32>
    %c0_3 = arith.constant 0 : index
    %c0_4 = arith.constant 0 : index
    %3 = vector.load %arg3[%c0_3, %c0_4] : memref<1x256xf32, #tpu.memory_space<vmem>>, vector<1x256xf32>
    %4 = vector.broadcast %3 : vector<1x256xf32> to vector<8x256xf32>
    %5 = arith.addf %2, %4 : vector<8x256xf32>
    %cst_5 = arith.constant 2.000000e-01 : f32
    %6 = vector.broadcast %cst_5 : f32 to vector<8x256xf32>
    %7 = arith.mulf %6, %5 : vector<8x256xf32>
    %8 = arith.maximumf %5, %7 : vector<8x256xf32>
    %9 = arith.truncf %8 : vector<8x256xf32> to vector<8x256xbf16>
    %c0_6 = arith.constant 0 : index
    %c0_7 = arith.constant 0 : index
    %10 = vector.load %arg4[%c0_6, %c0_7] : memref<256x256xbf16, #tpu.memory_space<vmem>>, vector<256x256xbf16>
    %cst_8 = arith.constant dense<0.000000e+00> : vector<8x256xf32>
    %11 = tpu.matmul %9, %10, %cst_8 {dimension_numbers = #tpu.dot_dimension_numbers<[1], [0], [0], [1], [0, 0, 1, 1], [], []>} : vector<8x256xbf16>, vector<256x256xbf16>, vector<8x256xf32> -> vector<8x256xf32>
    %c0_9 = arith.constant 0 : index
    %c0_10 = arith.constant 0 : index
    %12 = vector.load %arg5[%c0_9, %c0_10] : memref<1x256xf32, #tpu.memory_space<vmem>>, vector<1x256xf32>
    %13 = vector.broadcast %12 : vector<1x256xf32> to vector<8x256xf32>
    %14 = arith.addf %11, %13 : vector<8x256xf32>
    %cst_11 = arith.constant 2.000000e-01 : f32
    %15 = vector.broadcast %cst_11 : f32 to vector<8x256xf32>
    %16 = arith.mulf %15, %14 : vector<8x256xf32>
    %17 = arith.maximumf %14, %16 : vector<8x256xf32>
    %18 = arith.truncf %17 : vector<8x256xf32> to vector<8x256xbf16>
    %c0_12 = arith.constant 0 : index
    %c0_13 = arith.constant 0 : index
    %19 = vector.load %arg6[%c0_12, %c0_13] : memref<256x896xbf16, #tpu.memory_space<vmem>>, vector<256x896xbf16>
    %cst_14 = arith.constant dense<0.000000e+00> : vector<8x896xf32>
    %20 = tpu.matmul %18, %19, %cst_14 {dimension_numbers = #tpu.dot_dimension_numbers<[1], [0], [0], [1], [0, 0, 1, 1], [], []>} : vector<8x256xbf16>, vector<256x896xbf16>, vector<8x896xf32> -> vector<8x896xf32>
    %c0_15 = arith.constant 0 : index
    %c0_16 = arith.constant 0 : index
    %21 = vector.load %arg7[%c0_15, %c0_16] : memref<1x896xf32, #tpu.memory_space<vmem>>, vector<1x896xf32>
    %22 = vector.broadcast %21 : vector<1x896xf32> to vector<8x896xf32>
    %23 = arith.addf %20, %22 : vector<8x896xf32>
    %24 = math.tanh %23 : vector<8x896xf32>
    %c0_17 = arith.constant 0 : index
    %c0_18 = arith.constant 0 : index
    %25 = vector.load %arg8[%c0_17, %c0_18] : memref<8x896xf32, #tpu.memory_space<vmem>>, vector<8x896xf32>
    tpu.vector_store %arg8[%c0_17, %c0_18], %24 {strides = array<i32>} : memref<8x896xf32, #tpu.memory_space<vmem>>, vector<8x896xf32>,
    return
  }
  func.func @transform_0(%arg0: i32) -> (i32, i32) {
    %c0_i32 = arith.constant 0 : i32
    %c0_i32_0 = arith.constant 0 : i32
    return %arg0, %c0_i32 : i32, i32
  }
  func.func @transform_1(%arg0: i32) -> (i32, i32) {
    %c0_i32 = arith.constant 0 : i32
    %c0_i32_0 = arith.constant 0 : i32
    %c0_i32_1 = arith.constant 0 : i32
    return %c0_i32, %c0_i32_0 : i32, i32
  }
  func.func @transform_2(%arg0: i32) -> (i32, i32) {
    %c0_i32 = arith.constant 0 : i32
    %c0_i32_0 = arith.constant 0 : i32
    %c0_i32_1 = arith.constant 0 : i32
    return %c0_i32, %c0_i32_0 : i32, i32
  }
  func.func @transform_3(%arg0: i32) -> (i32, i32) {
    %c0_i32 = arith.constant 0 : i32
    %c0_i32_0 = arith.constant 0 : i32
    %c0_i32_1 = arith.constant 0 : i32
    return %c0_i32, %c0_i32_0 : i32, i32
  }
  func.func @transform_4(%arg0: i32) -> (i32, i32) {
    %c0_i32 = arith.constant 0 : i32
    %c0_i32_0 = arith.constant 0 : i32
    %c0_i32_1 = arith.constant 0 : i32
    return %c0_i32, %c0_i32_0 : i32, i32
  }
  func.func @transform_5(%arg0: i32) -> (i32, i32) {
    %c0_i32 = arith.constant 0 : i32
    %c0_i32_0 = arith.constant 0 : i32
    %c0_i32_1 = arith.constant 0 : i32
    return %c0_i32, %c0_i32_0 : i32, i32
  }
  func.func @transform_6(%arg0: i32) -> (i32, i32) {
    %c0_i32 = arith.constant 0 : i32
    %c0_i32_0 = arith.constant 0 : i32
    %c0_i32_1 = arith.constant 0 : i32
    return %c0_i32, %c0_i32_0 : i32, i32
  }
  func.func @transform_7(%arg0: i32) -> (i32, i32) {
    %c0_i32 = arith.constant 0 : i32
    %c0_i32_0 = arith.constant 0 : i32
    return %arg0, %c0_i32 : i32, i32
  }
}

</mosaic_0001>

<bundles_post_ra>
// kernel: tpu_custom_call.1
= control target key start
LH: loop header
LB: loop body
LE: loop exit
PB: predicated region body
PF: predicated region fallthrough
CT: control target
= control target key end

     0   :  { %12 = vsyncpa [#allocation3], 0  ;;  %s2044_s0 = inlined_call_operand.hbm [shape: bf16[8,64], index: 0, kind: input, shape index: {}]   ;;  %s2045_s1 = inlined_call_operand.hbm [shape: bf16[64,256], index: 1, kind: input, shape index: {}]   ;;  %s2046_s2 = inlined_call_operand.vmem [shape: f32[1,256], index: 2, kind: input, shape index: {}]   ;;  %s2047_s3 = inlined_call_operand.hbm [shape: bf16[256,256], index: 3, kind: input, shape index: {}]   ;;  %s2048_s4 = inlined_call_operand.hbm [shape: f32[1,256], index: 4, kind: input, shape index: {}]   ;;  %s2049_s5 = inlined_call_operand.hbm [shape: bf16[256,896], index: 5, kind: input, shape index: {}]   ;;  %s2050_s6 = inlined_call_operand.vmem [shape: f32[1,896], index: 6, kind: input, shape index: {}]   ;;  %s2051_s7 = inlined_call_operand.hbm [shape: f32[8,896], index: 7, kind: output, shape index: {}]  }
   0x1   :  { %13 = vsyncpa [#allocation6], 0 }
   0x2   :  { %14 = vsyncpa [#allocation9], 0 }
   0x3   :  { %15 = vsyncpa [#allocation4], 0  ;;  %s1938_s24 = smov [#allocation5]  }
   0x4   :  { %s31_s25 = sshll.u32 %s1938_s24, 4  ;;  %s32_s25 = int_to_ptr.vmem [resolvable:$true] %s31_s25 }
   0x5   :  { %s1818_s26 = scalar_lea.vmem %s32_s25, 1024  ;;  %p1823_p1 = scmp.lt.s32.totalorder %s32_s25, %s32_s25 }
   0x6   :  { %p1819_p0 = scmp.ne.s32.totalorder %s32_s25, %s1818_s26  ;;  %p1824_p2 = scmp.lt.s32.totalorder %s1818_s26, %s1818_s26 }
   0x8   :  { %p1825_p3 = por %p1824_p2, %p1823_p1 }
   0xa   :  { %p1826_p4 = pnand %p1825_p3, %p1819_p0 }
   0xc   :  { %1829 = shalt.err (!%p1826_p4)
}
   0xd   :  { %s1939_s27 = smov 128   ;;  %s1940_s28 = smov 8  }
   0xe   :  { %37 = dma.hbm_to_vmem [thread:$0]  %s2045_s1, 1024, %s32_s25, [#allocation6], %s1939_s27, %s1939_s27, %s1940_s28  }
   0xf   :  { %s1941_s8 = smov [#allocation8]   ;;  %s1942_s10 = smov [#allocation2]  }
  0x10   :  { %s58_s9 = sshll.u32 %s1941_s8, 4  ;;  %s22_s11 = sshll.u32 %s1942_s10, 4  ;;  %s59_s9 = int_to_ptr.vmem [resolvable:$true] %s58_s9  ;;  %s23_s11 = int_to_ptr.vmem [resolvable:$true] %s22_s11 }
  0x11   :  { %s1838_s12 = scalar_lea.vmem %s59_s9, 32  ;;  %p1843_p6 = scmp.lt.s32.totalorder %s59_s9, %s59_s9 }
  0x12   :  { %p1839_p5 = scmp.ne.s32.totalorder %s59_s9, %s1838_s12  ;;  %p1844_p7 = scmp.lt.s32.totalorder %s1838_s12, %s1838_s12 }
  0x14   :  { %p1845_p8 = por %p1844_p7, %p1843_p6 }
  0x16   :  { %p1846_p9 = pnand %p1845_p8, %p1839_p5 }
  0x18   :  { %1849 = shalt.err (!%p1846_p9)
}
  0x19   :  { %61 = dma.hbm_to_vmem [thread:$0]  %s2048_s4, 32, %s59_s9, [#allocation9]  }
  0x1a   :  { %s1858_s15 = scalar_lea.vmem %s23_s11, 64  ;;  %p1863_p11 = scmp.lt.s32.totalorder %s23_s11, %s23_s11 }
  0x1b   :  { %p1859_p10 = scmp.ne.s32.totalorder %s23_s11, %s1858_s15  ;;  %p1864_p12 = scmp.lt.s32.totalorder %s1858_s15, %s1858_s15 }
  0x1d   :  { %p1865_p13 = por %p1864_p12, %p1863_p11 }
  0x1f   :  { %p1866_p0 = pnand %p1865_p13, %p1859_p10 }
  0x21   :  { %1869 = shalt.err (!%p1866_p0)
}
  0x22   :  { %25 = dma.hbm_to_vmem [thread:$0]  %s2044_s0, 64, %s23_s11, [#allocation3]  }
  0x23   :  { %s1943_s17 = smov [#allocation7]   ;;  %s1944_s19 = smov [#allocation10]  }
  0x24   :  { %s45_s18 = sshll.u32 %s1943_s17, 4  ;;  %s67_s20 = sshll.u32 %s1944_s19, 4  ;;  %s46_s18 = int_to_ptr.vmem [resolvable:$true] %s45_s18  ;;  %s68_s20 = int_to_ptr.vmem [resolvable:$true] %s67_s20 }
  0x25   :  { %s1878_s21 = scalar_lea.vmem %s46_s18, 4096  ;;  %p1883_p2 = scmp.lt.s32.totalorder %s46_s18, %s46_s18 }
  0x26   :  { %p1879_p1 = scmp.ne.s32.totalorder %s46_s18, %s1878_s21  ;;  %p1884_p3 = scmp.lt.s32.totalorder %s1878_s21, %s1878_s21 }
  0x28   :  { %p1885_p4 = por %p1884_p3, %p1883_p2 }
  0x2a   :  { %p1886_p5 = pnand %p1885_p4, %p1879_p1 }
  0x2c   :  { %1889 = shalt.err (!%p1886_p5)
}
  0x2d   :  { %51 = dma.hbm_to_vmem [thread:$0]  %s2047_s3, 4096, %s46_s18, [#allocation6], %s1939_s27, %s1939_s27, %s1940_s28  }
  0x2e   :  { %s1898_s0 = scalar_lea.vmem %s68_s20, 14336  ;;  %p1903_p7 = scmp.lt.s32.totalorder %s68_s20, %s68_s20 }
  0x2f   :  { %p1899_p6 = scmp.ne.s32.totalorder %s68_s20, %s1898_s0  ;;  %p1904_p8 = scmp.lt.s32.totalorder %s1898_s0, %s1898_s0 }
  0x31   :  { %p1905_p9 = por %p1904_p8, %p1903_p7 }
  0x33   :  { %p1906_p10 = pnand %p1905_p9, %p1899_p6 }
  0x35   :  { %1909 = shalt.err (!%p1906_p10)
}
  0x36   :  { %s1945_s23 = smov 448   ;;  %s1946_s24 = smov 28  }
  0x37   :  { %73 = dma.hbm_to_vmem [thread:$0]  %s2049_s5, 14336, %s68_s20, [#allocation9], %s1945_s23, %s1945_s23, %s1946_s24  }
  0x38   :  { %1930 = dma.done.wait [#allocation3], 64  }
  0x39   :  { %1931 = vsyncadd [#allocation3], 4294967232 }
  0x3a   :  { %1932 = dma.done.wait [#allocation6], 5120  }
  0x3b   :  { %1933 = vsyncadd [#allocation6], 4294962176 }
  0x3c   :  { %1934 = dma.done.wait [#allocation9], 14368  }
  0x3d   :  { %1935 = vsyncadd [#allocation9], 4294952928  ;;  %v1947_v0 = vmov 0   ;;  %v1576_v1 = vld [vmem:[#allocation5 + $0x34] ss:$8 sps:$4 sm:$0xff]   ;;  %vm153_vm0 = vcmask 523264  }
  0x3e   :  { %189 = vmatprep.mubr.bf16.mxu0 %v1947_v0  ;;  %v1578_v2 = vld [vmem:[#allocation5 + $0x30] ss:$8 sps:$4 sm:$0xff]   ;;  %165 = vmatprep.subr.bf16.mxu0 %v1576_v1  ;;  %v1579_v3 = vld [vmem:[#allocation5 + $0x24] ss:$8 sps:$4 sm:$0xff]   ;;  %v1581_v4 = vld [vmem:[#allocation5 + $0x20] ss:$8 sps:$4 sm:$0xff]  }
  0x3f   :  { %166 = vmatpush1.bf16.msra.mxu0 %v1578_v2  ;;  %v1582_v5 = vld [vmem:[#allocation5 + $0x14] ss:$8 sps:$4 sm:$0xff]   ;;  %v1584_v6 = vld [vmem:[#allocation5 + $0x10] ss:$8 sps:$4 sm:$0xff]   ;;  %v1591_v9 = vld [vmem:[#allocation7 + $0x64] ss:$8 sps:$4 sm:$0xff]  }
  0x40   :  { %167 = vmatprep.subr.bf16.mxu0 %v1579_v3  ;;  %v1588_v7 = vld [vmem:[#allocation7 + $0x74] ss:$8 sps:$4 sm:$0xff]   ;;  %v1590_v8 = vld [vmem:[#allocation7 + $0x70] ss:$8 sps:$4 sm:$0xff]   ;;  %v1585_v10 = vld [vmem:[#allocation5 + $0x4] ss:$8 sps:$4 sm:$0xff]  }
  0x41   :  { %408 = vmatprep.subr.bf16.mxu1 %v1588_v7  ;;  %v1593_v11 = vld [vmem:[#allocation7 + $0x60] ss:$8 sps:$4 sm:$0xff]   ;;  %v1594_v12 = vld [vmem:[#allocation7 + $0x54] ss:$8 sps:$4 sm:$0xff]   ;;  %v1596_v14 = vld [vmem:[#allocation7 + $0x50] ss:$8 sps:$4 sm:$0xff]   ;;  %v103_v7 = vlaneseq }
  0x42   :  { %409 = vmatpush1.bf16.msra.mxu1 %v1590_v8  ;;  %v1587_v13 = vld [vmem:[#allocation5] ss:$8 sps:$4 sm:$0xff]   ;;  %v1597_v15 = vld [vmem:[#allocation7 + $0x44] ss:$8 sps:$4 sm:$0xff]   ;;  %v92_v16 = vld [vmem:[#allocation2] sm:$0xf] }
  0x43   :  { %168 = vmatpush1.bf16.msra.mxu0 %v1581_v4  ;;  %410 = vmatprep.subr.bf16.mxu1 %v1591_v9  ;;  %v1599_v17 = vld [vmem:[#allocation7 + $0x40] ss:$8 sps:$4 sm:$0xff]   ;;  %v1600_v18 = vld [vmem:[#allocation7 + $0x34] ss:$8 sps:$4 sm:$0xff]   ;;  %v1602_v19 = vld [vmem:[#allocation7 + $0x30] ss:$8 sps:$4 sm:$0xff]  }
  0x44   :  { %169 = vmatprep.subr.bf16.mxu0 %v1582_v5  ;;  %v1603_v20 = vld [vmem:[#allocation7 + $0x24] ss:$8 sps:$4 sm:$0xff]   ;;  %v1605_v21 = vld [vmem:[#allocation7 + $0x20] ss:$8 sps:$4 sm:$0xff]   ;;  %v1606_v22 = vld [vmem:[#allocation7 + $0x14] ss:$8 sps:$4 sm:$0xff]  }
  0x45   :  { %v1608_v23 = vld [vmem:[#allocation7 + $0x10] ss:$8 sps:$4 sm:$0xff]   ;;  %v1609_v24 = vld [vmem:[#allocation7 + $0x4] ss:$8 sps:$4 sm:$0xff]   ;;  %v1611_v25 = vld [vmem:[#allocation7] ss:$8 sps:$4 sm:$0xff]  }
  0x46   :  { %411 = vmatpush1.bf16.msra.mxu1 %v1593_v11  ;;  %v1612_v26 = vld [vmem:[#allocation7 + $0xf4] ss:$8 sps:$4 sm:$0xff]   ;;  %v1614_v27 = vld [vmem:[#allocation7 + $0xf0] ss:$8 sps:$4 sm:$0xff]   ;;  %v1615_v28 = vld [vmem:[#allocation7 + $0xe4] ss:$8 sps:$4 sm:$0xff]  }
  0x47   :  { %170 = vmatpush1.bf16.msra.mxu0 %v1584_v6  ;;  %412 = vmatprep.subr.bf16.mxu1 %v1594_v12  ;;  %v1617_v29 = vld [vmem:[#allocation7 + $0xe0] ss:$8 sps:$4 sm:$0xff]   ;;  %v1618_v30 = vld [vmem:[#allocation7 + $0xd4] ss:$8 sps:$4 sm:$0xff]   ;;  %v1620_v31 = vld [vmem:[#allocation7 + $0xd0] ss:$8 sps:$4 sm:$0xff]  }
  0x48   :  { %171 = vmatprep.subr.bf16.mxu0 %v1585_v10  ;;  %v1621_v32 = vld [vmem:[#allocation7 + $0xc4] ss:$8 sps:$4 sm:$0xff]   ;;  %v1623_v33 = vld [vmem:[#allocation7 + $0xc0] ss:$8 sps:$4 sm:$0xff]   ;;  %v1624_v34 = vld [vmem:[#allocation7 + $0xb4] ss:$8 sps:$4 sm:$0xff]  }
  0x49   :  { %v1626_v35 = vld [vmem:[#allocation7 + $0xb0] ss:$8 sps:$4 sm:$0xff]   ;;  %v1627_v36 = vld [vmem:[#allocation7 + $0xa4] ss:$8 sps:$4 sm:$0xff]   ;;  %v1629_v37 = vld [vmem:[#allocation7 + $0xa0] ss:$8 sps:$4 sm:$0xff]  }
  0x4a   :  { %413 = vmatpush1.bf16.msra.mxu1 %v1596_v14  ;;  %v1630_v38 = vld [vmem:[#allocation7 + $0x94] ss:$8 sps:$4 sm:$0xff]   ;;  %v1632_v39 = vld [vmem:[#allocation7 + $0x90] ss:$8 sps:$4 sm:$0xff]   ;;  %v1633_v40 = vld [vmem:[#allocation7 + $0x84] ss:$8 sps:$4 sm:$0xff]  }
  0x4b   :  { %172 = vmatpush1.bf16.msra.mxu0 %v1587_v13  ;;  %414 = vmatprep.subr.bf16.mxu1 %v1597_v15  ;;  %v1635_v41 = vld [vmem:[#allocation7 + $0x80] ss:$8 sps:$4 sm:$0xff]   ;;  %v1641_v44 = vld [vmem:[#allocation10 + $0x194] ss:$28 sps:$4 sm:$0xff]   ;;  %v2010_v8 = vshrl.u32 %v103_v7, 7 }
  0x4c   :  { %v1636_v42 = vld [vmem:[#allocation10 + $0x188] ss:$28 sps:$4 sm:$0xff]   ;;  %v1644_v45 = vld [vmem:[#allocation10 + $0x154] ss:$28 sps:$4 sm:$0xff]   ;;  %v1650_v47 = vld [vmem:[#allocation10 + $0x11c] ss:$28 sps:$4 sm:$0xff]  }
  0x4d   :  { %v1638_v43 = vld [vmem:[#allocation10 + $0x18c] ss:$28 sps:$4 sm:$0xff]   ;;  %v1648_v48 = vld [vmem:[#allocation10 + $0x118] ss:$28 sps:$4 sm:$0xff]   ;;  %v1656_v49 = vld [vmem:[#allocation10 + $0xe4] ss:$28 sps:$4 sm:$0xff]  }
  0x4e   :  { %1398 = vmatmul.mubr.msk.bf16.vlgmr.msra.gmra.mxu0 %vm153_vm0, %v92_v16  ;;  %415 = vmatpush1.bf16.msra.mxu1 %v1599_v17  ;;  %v1642_v46 = vld [vmem:[#allocation10 + $0x150] ss:$28 sps:$4 sm:$0xff]   ;;  %v1654_v50 = vld [vmem:[#allocation10 + $0xe0] ss:$28 sps:$4 sm:$0xff]   ;;  %v1660_v52 = vld [vmem:[#allocation10 + $0xa8] ss:$28 sps:$4 sm:$0xff]  }
  0x4f   :  { %416 = vmatprep.subr.bf16.mxu1 %v1600_v18  ;;  %1196 = vmatprep.subr.bf16.mxu0 %v1638_v43  ;;  %v1662_v51 = vld [vmem:[#allocation10 + $0xac] ss:$28 sps:$4 sm:$0xff]   ;;  %v1668_v53 = vld [vmem:[#allocation10 + $0x74] ss:$28 sps:$4 sm:$0xff]   ;;  %v1674_v55 = vld [vmem:[#allocation10 + $0x3c] ss:$28 sps:$4 sm:$0xff]  }
  0x50   :  { %1197 = vmatpush1.bf16.msra.mxu0 %v1636_v42  ;;  %v1666_v54 = vld [vmem:[#allocation10 + $0x70] ss:$28 sps:$4 sm:$0xff]   ;;  %v1672_v56 = vld [vmem:[#allocation10 + $0x38] ss:$28 sps:$4 sm:$0xff]   ;;  %v1680_v57 = vld [vmem:[#allocation10 + $0x4] ss:$28 sps:$4 sm:$0xff]  }
  0x51   :  { %1198 = vmatprep.subr.bf16.mxu0 %v1644_v45  ;;  %v1678_v58 = vld [vmem:[#allocation10] ss:$28 sps:$4 sm:$0xff]   ;;  %v1686_v59 = vld [vmem:[#allocation10 + $0x34c] ss:$28 sps:$4 sm:$0xff]   ;;  %v1692_v61 = vld [vmem:[#allocation10 + $0x314] ss:$28 sps:$4 sm:$0xff]  }
  0x52   :  { %417 = vmatpush1.bf16.msra.mxu1 %v1602_v19  ;;  %v1684_v60 = vld [vmem:[#allocation10 + $0x348] ss:$28 sps:$4 sm:$0xff]   ;;  %v1690_v62 = vld [vmem:[#allocation10 + $0x310] ss:$28 sps:$4 sm:$0xff]   ;;  %v1698_v63 = vld [vmem:[#allocation10 + $0x2dc] ss:$28 sps:$4 sm:$0xff]  }
  0x53   :  { %418 = vmatprep.subr.bf16.mxu1 %v1603_v20  ;;  %v1696_v0 = vld [vmem:[#allocation10 + $0x2d8] ss:$28 sps:$4 sm:$0xff]   ;;  %v1704_v1 = vld [vmem:[#allocation10 + $0x2a4] ss:$28 sps:$4 sm:$0xff]   ;;  %v1710_v3 = vld [vmem:[#allocation10 + $0x26c] ss:$28 sps:$4 sm:$0xff]  }
  0x54   :  { %1199 = vmatpush1.bf16.msra.mxu0 %v1642_v46  ;;  %v1702_v2 = vld [vmem:[#allocation10 + $0x2a0] ss:$28 sps:$4 sm:$0xff]   ;;  %v1708_v4 = vld [vmem:[#allocation10 + $0x268] ss:$28 sps:$4 sm:$0xff]   ;;  %v1716_v5 = vld [vmem:[#allocation10 + $0x234] ss:$28 sps:$4 sm:$0xff]  }
  0x55   :  { %1200 = vmatprep.subr.bf16.mxu0 %v1650_v47  ;;  %v1714_v6 = vld [vmem:[#allocation10 + $0x230] ss:$28 sps:$4 sm:$0xff]   ;;  %v2013_v9 = vsub.s32 0, %v2010_v8  ;;  %v2019_v11 = vsub.s32 1, %v2010_v8  ;;  %v1695_v43 = vld [vmem:[#allocation10 + $0x31c] ss:$28 sps:$4 sm:$0xff]  }
  0x56   :  { %419 = vmatpush1.bf16.msra.mxu1 %v1605_v21  ;;  %v101_v10 = vld [vmem:[%s2046_s2] sm:$0x3]  ;;  %v1701_v45 = vld [vmem:[#allocation10 + $0x2e4] ss:$28 sps:$4 sm:$0xff]   ;;  %v1707_v47 = vld [vmem:[#allocation10 + $0x2ac] ss:$28 sps:$4 sm:$0xff]  }
  0x57   :  { %420 = vmatprep.subr.bf16.mxu1 %v1606_v22  ;;  %v106_v12 = vrot.slane %v101_v10, %v2013_v9  ;;  %v110_v13 = vrot.slane %v101_v10, %v2019_v11  ;;  %v1687_v42 = vld [vmem:[#allocation10 + $0x350] ss:$28 sps:$4 sm:$0xff]   ;;  %v1699_v46 = vld [vmem:[#allocation10 + $0x2e0] ss:$28 sps:$4 sm:$0xff]  }
  0x58   :  { %1201 = vmatpush1.bf16.msra.mxu0 %v1648_v48  ;;  %v1705_v48 = vld [vmem:[#allocation10 + $0x2a8] ss:$28 sps:$4 sm:$0xff]  }
  0x59   :  { %1202 = vmatprep.subr.bf16.mxu0 %v1656_v49  ;;  %v1713_v49 = vld [vmem:[#allocation10 + $0x274] ss:$28 sps:$4 sm:$0xff]  }
  0x5a   :  { %421 = vmatpush1.bf16.msra.mxu1 %v1608_v23 }
  0x5b   :  { %422 = vmatprep.subr.bf16.mxu1 %v1609_v24 }
  0x5c   :  { %1203 = vmatpush1.bf16.msra.mxu0 %v1654_v50  ;;  %v1711_v50 = vld [vmem:[#allocation10 + $0x270] ss:$28 sps:$4 sm:$0xff]  }
  0x5d   :  { %1204 = vmatprep.subr.bf16.mxu0 %v1662_v51  ;;  %v1719_v51 = vld [vmem:[#allocation10 + $0x23c] ss:$28 sps:$4 sm:$0xff]  }
  0x5e   :  { %423 = vmatpush1.bf16.msra.mxu1 %v1611_v25  ;;  %v1639_v25 = vld [vmem:[#allocation10 + $0x190] ss:$28 sps:$4 sm:$0xff]  }
  0x5f   :  { %424 = vmatprep.subr.bf16.mxu1 %v1612_v26 }
  0x60   :  { %1205 = vmatpush1.bf16.msra.mxu0 %v1660_v52  ;;  %v1717_v52 = vld [vmem:[#allocation10 + $0x238] ss:$28 sps:$4 sm:$0xff]  }
  0x61   :  { %1206 = vmatprep.subr.bf16.mxu0 %v1668_v53  ;;  %v1722_v53 = vld [vmem:[#allocation10 + $0x1fc] ss:$28 sps:$4 sm:$0xff]  }
  0x62   :  { %425 = vmatpush2.bf16.msra.mxu1 %v1614_v27  ;;  %v1647_v27 = vld [vmem:[#allocation10 + $0x15c] ss:$28 sps:$4 sm:$0xff]  }
  0x63   :  { %426 = vmatprep.subr.bf16.mxu1 %v1615_v28  ;;  %v1645_v28 = vld [vmem:[#allocation10 + $0x158] ss:$28 sps:$4 sm:$0xff]  }
  0x64   :  { %1207 = vmatpush1.bf16.msra.mxu0 %v1666_v54  ;;  %v1725_v54 = vld [vmem:[#allocation10 + $0x204] ss:$28 sps:$4 sm:$0xff]  }
  0x65   :  { %1208 = vmatprep.subr.bf16.mxu0 %v1674_v55  ;;  %v1720_v55 = vld [vmem:[#allocation10 + $0x1f8] ss:$28 sps:$4 sm:$0xff]  }
  0x66   :  { %427 = vmatpush2.bf16.msra.mxu1 %v1617_v29  ;;  %v1653_v29 = vld [vmem:[#allocation10 + $0x124] ss:$28 sps:$4 sm:$0xff]  }
  0x67   :  { %428 = vmatprep.subr.bf16.mxu1 %v1618_v30  ;;  %v1651_v30 = vld [vmem:[#allocation10 + $0x120] ss:$28 sps:$4 sm:$0xff]  }
  0x68   :  { %1209 = vmatpush1.bf16.msra.mxu0 %v1672_v56  ;;  %v1723_v56 = vld [vmem:[#allocation10 + $0x200] ss:$28 sps:$4 sm:$0xff]  }
  0x69   :  { %1210 = vmatprep.subr.bf16.mxu0 %v1680_v57  ;;  %v1728_v57 = vld [vmem:[#allocation10 + $0x1c4] ss:$28 sps:$4 sm:$0xff]  }
  0x6a   :  { %429 = vmatpush2.bf16.msra.mxu1 %v1620_v31  ;;  %v1659_v31 = vld [vmem:[#allocation10 + $0xec] ss:$28 sps:$4 sm:$0xff]  }
  0x6b   :  { %430 = vmatprep.subr.bf16.mxu1 %v1621_v32  ;;  %v1657_v32 = vld [vmem:[#allocation10 + $0xe8] ss:$28 sps:$4 sm:$0xff]  }
  0x6c   :  { %1211 = vmatpush1.bf16.msra.mxu0 %v1678_v58  ;;  %v1731_v58 = vld [vmem:[#allocation10 + $0x1cc] ss:$28 sps:$4 sm:$0xff]  }
  0x6d   :  { %1212 = vmatprep.subr.bf16.mxu0 %v1686_v59  ;;  %v1726_v59 = vld [vmem:[#allocation10 + $0x1c0] ss:$28 sps:$4 sm:$0xff]  }
  0x6e   :  { %431 = vmatpush2.bf16.msra.mxu1 %v1623_v33  ;;  %v1665_v33 = vld [vmem:[#allocation10 + $0xb4] ss:$28 sps:$4 sm:$0xff]  }
  0x6f   :  { %432 = vmatprep.subr.bf16.mxu1 %v1624_v34  ;;  %v1663_v34 = vld [vmem:[#allocation10 + $0xb0] ss:$28 sps:$4 sm:$0xff]  }
  0x70   :  { %1213 = vmatpush2.bf16.msra.mxu0 %v1684_v60  ;;  %v1729_v60 = vld [vmem:[#allocation10 + $0x1c8] ss:$28 sps:$4 sm:$0xff]  }
  0x71   :  { %1214 = vmatprep.subr.bf16.mxu0 %v1692_v61  ;;  %v1734_v61 = vld [vmem:[#allocation10 + $0x19c] ss:$28 sps:$4 sm:$0xff]  }
  0x72   :  { %433 = vmatpush2.bf16.msra.mxu1 %v1626_v35  ;;  %v1671_v35 = vld [vmem:[#allocation10 + $0x7c] ss:$28 sps:$4 sm:$0xff]  }
  0x73   :  { %434 = vmatprep.subr.bf16.mxu1 %v1627_v36  ;;  %v1669_v36 = vld [vmem:[#allocation10 + $0x78] ss:$28 sps:$4 sm:$0xff]  }
  0x74   :  { %1215 = vmatpush2.bf16.msra.mxu0 %v1690_v62  ;;  %v1735_v62 = vld [vmem:[#allocation10 + $0x360] ss:$28 sps:$4 sm:$0xff]  }
  0x75   :  { %1216 = vmatprep.subr.bf16.mxu0 %v1698_v63  ;;  %v236_v63 = vld [vmem:[#allocation8] sm:$0x3] }
  0x76   :  { %435 = vmatpush2.bf16.msra.mxu1 %v1629_v37  ;;  %v1677_v37 = vld [vmem:[#allocation10 + $0x44] ss:$28 sps:$4 sm:$0xff]  }
  0x77   :  { %436 = vmatprep.subr.bf16.mxu1 %v1630_v38  ;;  %v1675_v38 = vld [vmem:[#allocation10 + $0x40] ss:$28 sps:$4 sm:$0xff]  }
  0x78   :  { %1217 = vmatpush2.bf16.msra.mxu0 %v1696_v0  ;;  %v241_v0 = vrot.slane %v236_v63, %v2013_v9 }
  0x79   :  { %1218 = vmatprep.subr.bf16.mxu0 %v1704_v1  ;;  %v245_v1 = vrot.slane %v236_v63, %v2019_v11  ;;  %v595_v63 = vsub.s32 2, %v2010_v8 }
  0x7a   :  { %437 = vmatpush2.bf16.msra.mxu1 %v1632_v39  ;;  %v1683_v39 = vld [vmem:[#allocation10 + $0xc] ss:$28 sps:$4 sm:$0xff]  }
  0x7b   :  { %438 = vmatprep.subr.bf16.mxu1 %v1633_v40  ;;  %v1681_v40 = vld [vmem:[#allocation10 + $0x8] ss:$28 sps:$4 sm:$0xff]  }
  0x7c   :  { %1219 = vmatpush2.bf16.msra.mxu0 %v1702_v2 }
  0x7d   :  { %1220 = vmatprep.subr.bf16.mxu0 %v1710_v3 }
  0x7e   :  { %439 = vmatpush2.bf16.msra.mxu1 %v1635_v41  ;;  %v1689_v41 = vld [vmem:[#allocation10 + $0x354] ss:$28 sps:$4 sm:$0xff]  }
  0x7f   :  { %1237 = vmatprep.subr.bf16.mxu1 %v1641_v44  ;;  %v1693_v44 = vld [vmem:[#allocation10 + $0x318] ss:$28 sps:$4 sm:$0xff]  }
  0x80   :  { %1221 = vmatpush2.bf16.msra.mxu0 %v1708_v4 }
  0x81   :  { %1222 = vmatprep.subr.bf16.mxu0 %v1716_v5 }
  0x84   :  { %1223 = vmatpush2.bf16.msra.mxu0 %v1714_v6 }
  0x85   :  { %1224 = vmatprep.subr.bf16.mxu0 %v1722_v53  ;;  %v1783_v53 = vld [vmem:[#allocation10 + $0x2b4] ss:$28 sps:$4 sm:$0xff]  }
  0x88   :  { %1225 = vmatpush2.bf16.msra.mxu0 %v1720_v55  ;;  %v1786_v55 = vld [vmem:[#allocation10 + $0x27c] ss:$28 sps:$4 sm:$0xff]  }
  0x89   :  { %1226 = vmatprep.subr.bf16.mxu0 %v1728_v57  ;;  %v1789_v57 = vld [vmem:[#allocation10 + $0x244] ss:$28 sps:$4 sm:$0xff]  }
  0x8c   :  { %1227 = vmatpush2.bf16.msra.mxu0 %v1726_v59  ;;  %v1792_v59 = vld [vmem:[#allocation10 + $0x20c] ss:$28 sps:$4 sm:$0xff]  }
  0x8d   :  { %1278 = vmatprep.subr.bf16.mxu0 %v1734_v61  ;;  %v1795_v61 = vld [vmem:[#allocation10 + $0x1d4] ss:$28 sps:$4 sm:$0xff]  }
 0x10e   :  { %v191_v14 = vpop.f32.mrf.mxu0 }
 0x10f   :  { %v192_v15 = vadd.f32 %v191_v14, %v106_v12 }
 0x110   :  { %v193_v16 = vpop.f32.mrf.mxu0 }
 0x111   :  { %v198_v17 = vmul.f32 0.2, %v192_v15  ;;  %v194_v18 = vadd.f32 %v193_v16, %v110_v13  ;;  %v1732_v16 = vld [vmem:[#allocation10 + $0x198] ss:$28 sps:$4 sm:$0xff]  }
 0x112   :  { %v195_v19 = vpop.f32.mrf.mxu0 }
 0x113   :  { %v199_v20 = vmul.f32 0.2, %v194_v18  ;;  %v200_v21 = vmax.f32 %v192_v15, %v198_v17  ;;  %v1736_v17 = vld [vmem:[#allocation10 + $0x1a0] ss:$28 sps:$4 sm:$0xff]  }
 0x114   :  { %v196_v22 = vpop.f32.mrf.mxu0  ;;  %v1739_v19 = vld [vmem:[#allocation10 + $0x164] ss:$28 sps:$4 sm:$0xff]  }
 0x115   :  { %v201_v23 = vmax.f32 %v194_v18, %v199_v20  ;;  %v202_v26 = vpack.c.bf16 %v200_v21, %v200_v21  ;;  %v1740_v20 = vld [vmem:[#allocation10 + $0x328] ss:$28 sps:$4 sm:$0xff]   ;;  %v1737_v21 = vld [vmem:[#allocation10 + $0x160] ss:$28 sps:$4 sm:$0xff]  }
 0x116   :  { %v1741_v22 = vld [vmem:[#allocation10 + $0x168] ss:$28 sps:$4 sm:$0xff]  }
 0x117   :  { %v203_v24 = vpack.c.bf16 %v201_v23, %v201_v23  ;;  %v1744_v23 = vld [vmem:[#allocation10 + $0x12c] ss:$28 sps:$4 sm:$0xff]  }
 0x119   :  { %440 = vmatprep.mubr.bf16.mxu1 %v203_v24  ;;  %v1745_v24 = vld [vmem:[#allocation10 + $0x2f0] ss:$28 sps:$4 sm:$0xff]  }
 0x11a   :  { %441 = vmatmul.mubr.bf16.vlgmr.msra.gmra.mxu1 %v202_v26  ;;  %v1746_v26 = vld [vmem:[#allocation10 + $0x130] ss:$28 sps:$4 sm:$0xff]  }
 0x11b   :  { %1238 = vmatpush1.bf16.msra.mxu1 %v1639_v25  ;;  %v1742_v25 = vld [vmem:[#allocation10 + $0x128] ss:$28 sps:$4 sm:$0xff]  }
 0x11c   :  { %1239 = vmatprep.subr.bf16.mxu1 %v1647_v27  ;;  %v1749_v27 = vld [vmem:[#allocation10 + $0xf4] ss:$28 sps:$4 sm:$0xff]  }
 0x11f   :  { %1240 = vmatpush1.bf16.msra.mxu1 %v1645_v28  ;;  %v1750_v28 = vld [vmem:[#allocation10 + $0x2b8] ss:$28 sps:$4 sm:$0xff]  }
 0x120   :  { %1241 = vmatprep.subr.bf16.mxu1 %v1653_v29  ;;  %v1747_v29 = vld [vmem:[#allocation10 + $0xf0] ss:$28 sps:$4 sm:$0xff]  }
 0x123   :  { %1242 = vmatpush1.bf16.msra.mxu1 %v1651_v30  ;;  %v1751_v30 = vld [vmem:[#allocation10 + $0xf8] ss:$28 sps:$4 sm:$0xff]  }
 0x124   :  { %1243 = vmatprep.subr.bf16.mxu1 %v1659_v31  ;;  %v1754_v31 = vld [vmem:[#allocation10 + $0xbc] ss:$28 sps:$4 sm:$0xff]  }
 0x127   :  { %1244 = vmatpush1.bf16.msra.mxu1 %v1657_v32  ;;  %v1755_v32 = vld [vmem:[#allocation10 + $0x280] ss:$28 sps:$4 sm:$0xff]  }
 0x128   :  { %1245 = vmatprep.subr.bf16.mxu1 %v1665_v33  ;;  %v1752_v33 = vld [vmem:[#allocation10 + $0xb8] ss:$28 sps:$4 sm:$0xff]  }
 0x12b   :  { %1246 = vmatpush1.bf16.msra.mxu1 %v1663_v34  ;;  %v1756_v34 = vld [vmem:[#allocation10 + $0xc0] ss:$28 sps:$4 sm:$0xff]  }
 0x12c   :  { %1247 = vmatprep.subr.bf16.mxu1 %v1671_v35  ;;  %v1759_v35 = vld [vmem:[#allocation10 + $0x84] ss:$28 sps:$4 sm:$0xff]  }
 0x12f   :  { %1248 = vmatpush1.bf16.msra.mxu1 %v1669_v36  ;;  %v1760_v36 = vld [vmem:[#allocation10 + $0x248] ss:$28 sps:$4 sm:$0xff]  }
 0x130   :  { %1249 = vmatprep.subr.bf16.mxu1 %v1677_v37  ;;  %v1757_v37 = vld [vmem:[#allocation10 + $0x80] ss:$28 sps:$4 sm:$0xff]  }
 0x133   :  { %1250 = vmatpush1.bf16.msra.mxu1 %v1675_v38  ;;  %v1761_v38 = vld [vmem:[#allocation10 + $0x88] ss:$28 sps:$4 sm:$0xff]  }
 0x134   :  { %1251 = vmatprep.subr.bf16.mxu1 %v1683_v39  ;;  %v1764_v39 = vld [vmem:[#allocation10 + $0x4c] ss:$28 sps:$4 sm:$0xff]  }
 0x137   :  { %1252 = vmatpush1.bf16.msra.mxu1 %v1681_v40  ;;  %v1765_v40 = vld [vmem:[#allocation10 + $0x210] ss:$28 sps:$4 sm:$0xff]  }
 0x138   :  { %1253 = vmatprep.subr.bf16.mxu1 %v1689_v41  ;;  %v1762_v41 = vld [vmem:[#allocation10 + $0x48] ss:$28 sps:$4 sm:$0xff]  }
 0x13b   :  { %1254 = vmatpush2.bf16.msra.mxu1 %v1687_v42  ;;  %v1766_v42 = vld [vmem:[#allocation10 + $0x50] ss:$28 sps:$4 sm:$0xff]  }
 0x13c   :  { %1255 = vmatprep.subr.bf16.mxu1 %v1695_v43  ;;  %v1769_v43 = vld [vmem:[#allocation10 + $0x14] ss:$28 sps:$4 sm:$0xff]  }
 0x13f   :  { %1256 = vmatpush2.bf16.msra.mxu1 %v1693_v44  ;;  %v1770_v44 = vld [vmem:[#allocation10 + $0x1d8] ss:$28 sps:$4 sm:$0xff]  }
 0x140   :  { %1257 = vmatprep.subr.bf16.mxu1 %v1701_v45  ;;  %v1767_v45 = vld [vmem:[#allocation10 + $0x10] ss:$28 sps:$4 sm:$0xff]  }
 0x143   :  { %1258 = vmatpush2.bf16.msra.mxu1 %v1699_v46  ;;  %v1771_v46 = vld [vmem:[#allocation10 + $0x18] ss:$28 sps:$4 sm:$0xff]  }
 0x144   :  { %1259 = vmatprep.subr.bf16.mxu1 %v1707_v47  ;;  %v1774_v47 = vld [vmem:[#allocation10 + $0x35c] ss:$28 sps:$4 sm:$0xff]  }
 0x147   :  { %1260 = vmatpush2.bf16.msra.mxu1 %v1705_v48  ;;  %v1772_v48 = vld [vmem:[#allocation10 + $0x358] ss:$28 sps:$4 sm:$0xff]  }
 0x148   :  { %1261 = vmatprep.subr.bf16.mxu1 %v1713_v49  ;;  %v1777_v49 = vld [vmem:[#allocation10 + $0x324] ss:$28 sps:$4 sm:$0xff]  }
 0x14b   :  { %1262 = vmatpush2.bf16.msra.mxu1 %v1711_v50  ;;  %v1775_v50 = vld [vmem:[#allocation10 + $0x320] ss:$28 sps:$4 sm:$0xff]  }
 0x14c   :  { %1263 = vmatprep.subr.bf16.mxu1 %v1719_v51  ;;  %v1780_v51 = vld [vmem:[#allocation10 + $0x2ec] ss:$28 sps:$4 sm:$0xff]  }
 0x14f   :  { %1264 = vmatpush2.bf16.msra.mxu1 %v1717_v52  ;;  %v1778_v52 = vld [vmem:[#allocation10 + $0x2e8] ss:$28 sps:$4 sm:$0xff]  }
 0x150   :  { %1265 = vmatprep.subr.bf16.mxu1 %v1725_v54  ;;  %v1781_v54 = vld [vmem:[#allocation10 + $0x2b0] ss:$28 sps:$4 sm:$0xff]  }
 0x153   :  { %1266 = vmatpush2.bf16.msra.mxu1 %v1723_v56  ;;  %v1784_v56 = vld [vmem:[#allocation10 + $0x278] ss:$28 sps:$4 sm:$0xff]  }
 0x154   :  { %1267 = vmatprep.subr.bf16.mxu1 %v1731_v58  ;;  %v1787_v58 = vld [vmem:[#allocation10 + $0x240] ss:$28 sps:$4 sm:$0xff]  }
 0x157   :  { %1268 = vmatpush2.bf16.msra.mxu1 %v1729_v60  ;;  %v1790_v60 = vld [vmem:[#allocation10 + $0x208] ss:$28 sps:$4 sm:$0xff]  }
 0x158   :  { %1543 = vmatprep.subr.bf16.mxu1 %v1735_v62  ;;  %v1793_v62 = vld [vmem:[#allocation10 + $0x1d0] ss:$28 sps:$4 sm:$0xff]  }
 0x1da   :  { %v442_v2 = vpop.f32.mrf.mxu1 }
 0x1db   :  { %v443_v3 = vadd.f32 %v442_v2, %v241_v0  ;;  %v583_v0 = vld [vmem:[%s2050_s6] sm:$0xff]  ;;  %s1948_s6 = smov [#allocation11]  }
 0x1dc   :  { %v444_v4 = vpop.f32.mrf.mxu1  ;;  %v588_v2 = vrot.slane %v583_v0, %v2013_v9  ;;  %s1379_s28 = sshll.u32 %s1948_s6, 4  ;;  %s1380_s28 = int_to_ptr.vmem [resolvable:$true] %s1379_s28 }
 0x1dd   :  { %v449_v5 = vmul.f32 0.2, %v443_v3  ;;  %v445_v6 = vadd.f32 %v444_v4, %v245_v1  ;;  %v599_v1 = vsub.s32 3, %v2010_v8  ;;  %v592_v4 = vrot.slane %v583_v0, %v2019_v11  ;;  %s1910_s29 = scalar_lea.vmem %s1380_s28, 896  ;;  %p1915_p12 = scmp.lt.s32.totalorder %s1380_s28, %s1380_s28 }
 0x1de   :  { %v446_v7 = vpop.f32.mrf.mxu1  ;;  %p1911_p11 = scmp.ne.s32.totalorder %s1380_s28, %s1910_s29  ;;  %p1916_p13 = scmp.lt.s32.totalorder %s1910_s29, %s1910_s29 }
 0x1df   :  { %v450_v10 = vmul.f32 0.2, %v445_v6  ;;  %v451_v12 = vmax.f32 %v443_v3, %v449_v5  ;;  %v596_v3 = vrot.slane %v583_v0, %v595_v63  ;;  %v600_v5 = vrot.slane %v583_v0, %v599_v1 }
 0x1e0   :  { %v447_v13 = vpop.f32.mrf.mxu1  ;;  %p1917_p0 = por %p1916_p13, %p1915_p12 }
 0x1e1   :  { %v452_v14 = vmax.f32 %v445_v6, %v450_v10  ;;  %v2025_v18 = vpack.c.bf16 %v451_v12, %v451_v12 }
 0x1e2   :  { %p1918_p1 = pnand %p1917_p0, %p1911_p11 }
 0x1e3   :  { %v454_v15 = vpack.c.bf16 %v452_v14, %v452_v14 }
 0x1e5   :  { %1228 = vmatprep.mubr.bf16.mxu0 %v454_v15  ;;  %1269 = vmatprep.mubr.bf16.mxu1 %v454_v15 }
 0x1e6   :  { %1229 = vmatmul.mubr.bf16.vlgmr.msra.gmra.mxu0 %v2025_v18  ;;  %1270 = vmatmul.mubr.bf16.vlgmr.msra.gmra.mxu1 %v2025_v18 }
 0x1e7   :  { %1279 = vmatpush1.bf16.msra.mxu0 %v1732_v16  ;;  %1544 = vmatpush3.bf16.msra.mxu1 %v1736_v17 }
 0x1e8   :  { %1310 = vmatprep.mubr.bf16.mxu0 %v454_v15  ;;  %1351 = vmatprep.mubr.bf16.mxu1 %v454_v15 }
 0x1e9   :  { %1280 = vmatprep.subr.bf16.mxu0 %v1739_v19  ;;  %1545 = vmatprep.subr.bf16.mxu1 %v1740_v20 }
 0x1eb   :  { %1281 = vmatpush1.bf16.msra.mxu0 %v1737_v21  ;;  %1546 = vmatpush3.bf16.msra.mxu1 %v1741_v22 }
 0x1ec   :  { %1282 = vmatprep.subr.bf16.mxu0 %v1744_v23  ;;  %1547 = vmatprep.subr.bf16.mxu1 %v1745_v24  ;;  %v611_v23 = vsub.s32 6, %v2010_v8 }
 0x1ef   :  { %1283 = vmatpush1.bf16.msra.mxu0 %v1742_v25  ;;  %1548 = vmatpush3.bf16.msra.mxu1 %v1746_v26  ;;  %v612_v25 = vrot.slane %v583_v0, %v611_v23 }
 0x1f0   :  { %1284 = vmatprep.subr.bf16.mxu0 %v1749_v27  ;;  %1549 = vmatprep.subr.bf16.mxu1 %v1750_v28 }
 0x1f3   :  { %1285 = vmatpush1.bf16.msra.mxu0 %v1747_v29  ;;  %1550 = vmatpush3.bf16.msra.mxu1 %v1751_v30 }
 0x1f4   :  { %1286 = vmatprep.subr.bf16.mxu0 %v1754_v31  ;;  %1551 = vmatprep.subr.bf16.mxu1 %v1755_v32  ;;  %v603_v32 = vsub.s32 4, %v2010_v8 }
 0x1f7   :  { %1287 = vmatpush1.bf16.msra.mxu0 %v1752_v33  ;;  %1552 = vmatpush3.bf16.msra.mxu1 %v1756_v34  ;;  %v607_v33 = vsub.s32 5, %v2010_v8  ;;  %v604_v34 = vrot.slane %v583_v0, %v603_v32 }
 0x1f8   :  { %1288 = vmatprep.subr.bf16.mxu0 %v1759_v35  ;;  %1553 = vmatprep.subr.bf16.mxu1 %v1760_v36 }
 0x1f9   :  { %v608_v35 = vrot.slane %v583_v0, %v607_v33 }
 0x1fb   :  { %1289 = vmatpush1.bf16.msra.mxu0 %v1757_v37  ;;  %1554 = vmatpush3.bf16.msra.mxu1 %v1761_v38 }
 0x1fc   :  { %1290 = vmatprep.subr.bf16.mxu0 %v1764_v39  ;;  %1555 = vmatprep.subr.bf16.mxu1 %v1765_v40 }
 0x1ff   :  { %1291 = vmatpush1.bf16.msra.mxu0 %v1762_v41  ;;  %1556 = vmatpush3.bf16.msra.mxu1 %v1766_v42 }
 0x200   :  { %1292 = vmatprep.subr.bf16.mxu0 %v1769_v43  ;;  %1557 = vmatprep.subr.bf16.mxu1 %v1770_v44 }
 0x203   :  { %1293 = vmatpush1.bf16.msra.mxu0 %v1767_v45  ;;  %1558 = vmatpush3.bf16.msra.mxu1 %v1771_v46 }
 0x204   :  { %1294 = vmatprep.subr.bf16.mxu0 %v1774_v47 }
 0x206   :  { %1352 = vmatmul.mubr.bf16.vlgmr.msra.gmra.mxu1 %v2025_v18 }
 0x207   :  { %1295 = vmatpush2.bf16.msra.mxu0 %v1772_v48 }
 0x208   :  { %1296 = vmatprep.subr.bf16.mxu0 %v1777_v49 }
 0x20b   :  { %1297 = vmatpush2.bf16.msra.mxu0 %v1775_v50 }
 0x20c   :  { %1298 = vmatprep.subr.bf16.mxu0 %v1780_v51 }
 0x20f   :  { %1299 = vmatpush2.bf16.msra.mxu0 %v1778_v52 }
 0x210   :  { %1300 = vmatprep.subr.bf16.mxu0 %v1783_v53 }
 0x213   :  { %1301 = vmatpush2.bf16.msra.mxu0 %v1781_v54 }
 0x214   :  { %1302 = vmatprep.subr.bf16.mxu0 %v1786_v55 }
 0x217   :  { %1303 = vmatpush2.bf16.msra.mxu0 %v1784_v56 }
 0x218   :  { %1304 = vmatprep.subr.bf16.mxu0 %v1789_v57 }
 0x21b   :  { %1305 = vmatpush2.bf16.msra.mxu0 %v1787_v58 }
 0x21c   :  { %1306 = vmatprep.subr.bf16.mxu0 %v1792_v59 }
 0x21f   :  { %1307 = vmatpush2.bf16.msra.mxu0 %v1790_v60 }
 0x220   :  { %1308 = vmatprep.subr.bf16.mxu0 %v1795_v61 }
 0x223   :  { %1309 = vmatpush2.bf16.msra.mxu0 %v1793_v62 }
 0x226   :  { %1311 = vmatmul.mubr.bf16.vlgmr.msra.gmra.mxu0 %v2025_v18 }
 0x2a6   :  { %v1230_v6 = vpop.f32.mrf.mxu0  ;;  %v1271_v7 = vpop.f32.mrf.mxu1 }
 0x2a7   :  { %v1231_v10 = vadd.f32 %v1230_v6, %v588_v2  ;;  %v1272_v12 = vadd.f32 %v1271_v7, %v596_v3 }
 0x2a8   :  { %v1232_v13 = vpop.f32.mrf.mxu0  ;;  %v1273_v14 = vpop.f32.mrf.mxu1 }
 0x2a9   :  { %1796 = vtanh.f32 %v1231_v10  ;;  %v1233_v15 = vadd.f32 %v1232_v13, %v592_v4  ;;  %v1274_v16 = vadd.f32 %v1273_v14, %v600_v5 }
 0x2aa   :  { %1798 = vtanh.f32 %v1272_v12  ;;  %v1234_v17 = vpop.f32.mrf.mxu0  ;;  %v1275_v18 = vpop.f32.mrf.mxu1 }
 0x2ab   :  { %1800 = vtanh.f32 %v1233_v15 }
 0x2ac   :  { %1802 = vtanh.f32 %v1274_v16  ;;  %v1235_v19 = vpop.f32.mrf.mxu0  ;;  %v1276_v9 = vpop.f32.mrf.mxu1 }
 0x2b6   :  { %v1797_v20 = vpop.eup %1796 }
 0x2b7   :  { %v1799_v21 = vpop.eup %1798  ;;  %1366 = vst [vmem:[#allocation11] sm:$0xff] %v1797_v20 }
 0x2b8   :  { %v1801_v11 = vpop.eup %1800  ;;  %1368 = vst [vmem:[#allocation11 + $0x10] sm:$0xff] %v1799_v21 }
 0x2b9   :  { %v1803_v22 = vpop.eup %1802  ;;  %1367 = vst [vmem:[#allocation11 + $0x8] sm:$0xff] %v1801_v11 }
 0x2ba   :  { %1369 = vst [vmem:[#allocation11 + $0x18] sm:$0xff] %v1803_v22 }
 0x2c6   :  { %v1559_v24 = vpop.f32.mrf.mxu1 }
 0x2c8   :  { %v1560_v26 = vpop.f32.mrf.mxu1 }
 0x2c9   :  { %v1561_v27 = vadd.f32 %v1560_v26, %v1559_v24 }
 0x2ca   :  { %v1562_v28 = vpop.f32.mrf.mxu1 }
 0x2cb   :  { %v1354_v29 = vadd.f32 %v1561_v27, %v612_v25 }
 0x2cc   :  { %v1563_v30 = vpop.f32.mrf.mxu1 }
 0x2cd   :  { %1804 = vtanh.f32 %v1354_v29 }
 0x2da   :  { %v1805_v31 = vpop.eup %1804 }
 0x2db   :  { %1372 = vst [vmem:[#allocation11 + $0x30] sm:$0xff] %v1805_v31 }
 0x2e6   :  { %v1312_v36 = vpop.f32.mrf.mxu0 }
 0x2e7   :  { %v1313_v37 = vadd.f32 %v1312_v36, %v604_v34 }
 0x2e8   :  { %v1314_v38 = vpop.f32.mrf.mxu0 }
 0x2e9   :  { %1806 = vtanh.f32 %v1313_v37  ;;  %v1315_v39 = vadd.f32 %v1314_v38, %v608_v35 }
 0x2ea   :  { %v1316_v40 = vpop.f32.mrf.mxu0 }
 0x2eb   :  { %1808 = vtanh.f32 %v1315_v39 }
 0x2ec   :  { %v1317_v41 = vpop.f32.mrf.mxu0 }
 0x2f6   :  { %v1807_v42 = vpop.eup %1806 }
 0x2f7   :  { %1370 = vst [vmem:[#allocation11 + $0x20] sm:$0xff] %v1807_v42 }
 0x2f8   :  { %v1809_v43 = vpop.eup %1808 }
 0x2f9   :  { %1371 = vst [vmem:[#allocation11 + $0x28] sm:$0xff] %v1809_v43 }
 0x2fa   :  { %1921 = shalt.err (!%p1918_p1)
}
 0x2fb   :  { %1382 = dma.vmem_to_hbm [thread:$0]  %s1380_s28, 896, %s2051_s7, [#allocation4]  }
 0x2fc   :  { %1936 = dma.done.wait [#allocation4], 896  }
 0x2fd   :  { %1937 = vsyncadd [#allocation4], 4294966400 }
 0x2fe   :  { %1386 = vsyncpa [#allocation3], 1 }
 0x2ff   :  { %1387 = vsyncpa [#allocation6], 1 }
 0x300   :  { %1388 = vsyncpa [#allocation9], 1 }
 0x301   :  { %1389 = vsyncpa [#allocation4], 1 }

</bundles_post_ra>
